<compile_context>
chip_gen: v6e
topology: v6e:2x2x1
jax: 0.10.0
libtpu: 0.0.40
codegen_flags: <defaults>
</compile_context>

<pallas_src>
import math

import jax
import jax.numpy as jnp
from jax.experimental import pallas as pl
from jax.experimental.pallas import tpu as pltpu

_MAX_TILE_ELEMS = 1024 * 512          # 2 MiB per f32 input tile (proven-safe size)
_VMEM_LIMIT_BYTES = 32 * 1024 * 1024  # explicit scoped-VMEM cap


def _round_up(x, m):
    return ((x + m - 1) // m) * m


def _plan(rows, row_align, lane):
    """Static tiling plan.  rows is a multiple of row_align.

    Returns (ncores, tiles_per_core, tile_rows) such that
      * tile_rows is a multiple of row_align,
      * ncores * tiles_per_core * tile_rows >= rows,
      * every tile's start row is < rows (no fully out-of-bounds block).
    """
    max_tile_rows = max(row_align, _MAX_TILE_ELEMS // lane)
    ncores = 2 if rows >= 2 * row_align else 1
    nt = max(ncores, -(-rows // max_tile_rows))
    nt = _round_up(nt, ncores)
    while True:
        tile_rows = _round_up(-(-rows // nt), row_align)
        if (nt - 1) * tile_rows < rows:
            return ncores, nt // ncores, tile_rows
        nt -= ncores
        if nt < ncores:  # safety net (unreachable given the ncores gate)
            return 1, 1, _round_up(rows, row_align)


def _make_kernel(*, rows, lane, tile_rows, tiles_per_core, needs_mask):
    def kernel(recon_ref, x_ref, mu_ref, logvar_ref, out_ref, acc_ref):
        step = pl.program_id(1)

        @pl.when(step == 0)
        def _init():
            acc_ref[...] = jnp.zeros_like(acc_ref)

        # Elementwise squared error (pure VPU work; hidden under DMA).
        diff = recon_ref[...].astype(jnp.float32) - x_ref[...].astype(jnp.float32)
        sq = diff * diff

        if needs_mask:
            # Mask rows past the real data in the (unique) ragged last tile.
            core = pl.program_id(0)
            row0 = (core * tiles_per_core + step) * tile_rows
            valid = rows - row0  # >= 1 by construction of the tiling plan
            ridx = jax.lax.broadcasted_iota(jnp.int32, (tile_rows, lane), 0)
            sq = jnp.where(ridx < valid, sq, 0.0)

        # Accumulate into a tiny (8, lane) accumulator: only sublane-group vadds
        # per step; the single cross-lane/sublane reduction is deferred.
        acc_ref[...] += sq.reshape(tile_rows // 8, 8, lane).sum(axis=0)

        @pl.when(step == tiles_per_core - 1)
        def _finalize():
            mse_part = jnp.sum(acc_ref[...])
            mu_v = mu_ref[...].astype(jnp.float32)
            lv_v = logvar_ref[...].astype(jnp.float32)
            kl = -0.5 * jnp.sum(1.0 + lv_v - mu_v * mu_v - jnp.exp(lv_v))
            sub = jax.lax.broadcasted_iota(jnp.int32, (8, 128), 0)
            ln = jax.lax.broadcasted_iota(jnp.int32, (8, 128), 1)
            blk = jnp.where((sub == 0) & (ln == 0), mse_part,
                            jnp.where((sub == 0) & (ln == 1), kl, 0.0))
            out_ref[0] = blk

    return kernel


def vae_loss(l_recon, x, mu, logvar, kl_weight):
    """Returns scalar: sum((l_recon - x)^2) + kl_weight * KL(mu, logvar)."""
    assert l_recon.shape == x.shape and l_recon.dtype == x.dtype
    B, D = mu.shape

    total = math.prod(l_recon.shape)
    itemsize = jnp.dtype(l_recon.dtype).itemsize
    row_align = max(8, 32 // itemsize)  # 8 for f32, 16 for bf16/f16, 32 for 8-bit

    # Pick the widest lane count that gives a whole number of sublane groups
    # -> zero-copy reshape, no padding.
    lane = None
    for cand in (512, 256, 128):
        if total % (cand * row_align) == 0:
            lane = cand
            break

    recon_flat = jnp.reshape(l_recon, (-1,))
    x_flat = jnp.reshape(x, (-1,))
    if lane is None:
        # TODO(synk): pathological sizes (total not a multiple of 128*row_align)
        # still take a padded copy; could mask lanes in-kernel instead.
        lane = 128
        padded = _round_up(total, lane * row_align)
        recon_flat = jnp.pad(recon_flat, (0, padded - total))
        x_flat = jnp.pad(x_flat, (0, padded - total))
        total = padded

    rows = total // lane
    recon2d = recon_flat.reshape(rows, lane)
    x2d = x_flat.reshape(rows, lane)

    ncores, tpc, tile_rows = _plan(rows, row_align, lane)
    needs_mask = (ncores * tpc * tile_rows) != rows

    kernel = _make_kernel(rows=rows, lane=lane, tile_rows=tile_rows,
                          tiles_per_core=tpc, needs_mask=needs_mask)

    out = pl.pallas_call(
        kernel,
        out_shape=jax.ShapeDtypeStruct((ncores, 8, 128), jnp.float32),
        grid_spec=pltpu.PrefetchScalarGridSpec(
            num_scalar_prefetch=0,
            grid=(ncores, tpc),
            in_specs=[
                pl.BlockSpec((tile_rows, lane), lambda c, i: (c * tpc + i, 0)),
                pl.BlockSpec((tile_rows, lane), lambda c, i: (c * tpc + i, 0)),
                pl.BlockSpec((B, D), lambda c, i: (0, 0)),   # mu (resident)
                pl.BlockSpec((B, D), lambda c, i: (0, 0)),   # logvar (resident)
            ],
            out_specs=pl.BlockSpec((1, 8, 128), lambda c, i: (c, 0, 0)),
            scratch_shapes=[pltpu.VMEM((8, lane), jnp.float32)],
        ),
        compiler_params=pltpu.CompilerParams(
            dimension_semantics=("parallel", "arbitrary"),
            vmem_limit_bytes=_VMEM_LIMIT_BYTES,
        ),
    )(recon2d, x2d, mu, logvar)

    mse = jnp.sum(out[:, 0, 0])     # add per-core partial sums
    kl = out[0, 0, 1]               # identical on every core; take core 0's
    return mse + jnp.asarray(kl_weight, jnp.float32) * kl


def vae_loss_ref(l_recon, x, mu, logvar, kl_weight):
    mse = jnp.sum((l_recon.astype(jnp.float32) - x.astype(jnp.float32)) ** 2)
    kl = -0.5 * jnp.sum(1.0 + logvar - mu**2 - jnp.exp(logvar))
    return mse + kl_weight * kl


if __name__ == "__main__":
    key = jax.random.PRNGKey(0)
    k1, k2, k3, k4 = jax.random.split(key, 4)

    # Spec-sized inputs: batch=2, channels=4, spatial=16x16, latent=32.
    B, C, H, W, D = 2, 4, 16, 16, 32
    l_recon = jax.random.normal(k1, (B, C, H, W), jnp.float32)
    x = jax.random.normal(k2, (B, C, H, W), jnp.float32)
    mu = jax.random.normal(k3, (B, D), jnp.float32) * 0.5
    logvar = jax.random.normal(k4, (B, D), jnp.float32) * 0.1

    for klw in (0.25, 0.0):  # module default KL_weight is 0
        out = jax.block_until_ready(vae_loss(l_recon, x, mu, logvar, klw))
        ref = vae_loss_ref(l_recon, x, mu, logvar, klw)
        assert jnp.allclose(out, ref, rtol=1e-4, atol=1e-2), (klw, out, ref)

    # Exercise the multi-tile / two-core / ragged-last-tile (masked) path.
    k5, k6 = jax.random.split(k1, 2)
    r2 = jax.random.normal(k5, (5, 4, 32, 32), jnp.float32)
    x2 = jax.random.normal(k6, (5, 4, 32, 32), jnp.float32)
    out2 = jax.block_until_ready(vae_loss(r2, x2, mu, logvar, 0.5))
    ref2 = vae_loss_ref(r2, x2, mu, logvar, 0.5)
    assert jnp.allclose(out2, ref2, rtol=1e-4, atol=1e-2), (out2, ref2)

    # bf16 inputs pass straight through (half the HBM bytes); math stays f32.
    r3 = jax.random.normal(k5, (2, 8, 32, 32), jnp.float32).astype(jnp.bfloat16)
    x3 = jax.random.normal(k6, (2, 8, 32, 32), jnp.float32).astype(jnp.bfloat16)
    out3 = jax.block_until_ready(vae_loss(r3, x3, mu, logvar, 0.0))
    ref3 = vae_loss_ref(r3, x3, mu, logvar, 0.0)
    assert jnp.allclose(out3, ref3, rtol=1e-3, atol=1e-1), (out3, ref3)

    print("KERNEL_OK")
</pallas_src>

<mosaic_0001>
module attributes {stable_mosaic.version = 11 : i64} {
  func.func @kernel(%arg0: i32, %arg1: i32, %arg2: memref<8x256xf32, #tpu.memory_space<vmem>>, %arg3: memref<8x256xf32, #tpu.memory_space<vmem>>, %arg4: memref<2x32xf32, #tpu.memory_space<vmem>>, %arg5: memref<2x32xf32, #tpu.memory_space<vmem>>, %arg6: memref<1x8x128xf32, #tpu.memory_space<vmem>>, %arg7: memref<8x256xf32, #tpu.memory_space<vmem>>) attributes {dimension_semantics = [#tpu.dimension_semantics<parallel>, #tpu.dimension_semantics<arbitrary>], iteration_bounds = array<i64: 1, 1>, scalar_prefetch = 0 : i64, scratch_operands = 1 : i64, tpu.core_type = #tpu.core_type<tc>, window_params = [{transform_indices = @transform_0, window_bounds = array<i64: 8, 256>}, {transform_indices = @transform_1, window_bounds = array<i64: 8, 256>}, {pipeline_mode = #tpu.pipeline_mode<synchronous>, transform_indices = @transform_2, window_bounds = array<i64: 2, 32>}, {pipeline_mode = #tpu.pipeline_mode<synchronous>, transform_indices = @transform_3, window_bounds = array<i64: 2, 32>}, {transform_indices = @transform_4, window_bounds = array<i64: 1, 8, 128>}]} {
    %c0_i32 = arith.constant 0 : i32
    %0 = arith.cmpi eq, %arg1, %c0_i32 : i32
    %1 = arith.extui %0 : i1 to i32
    %c0_i32_0 = arith.constant 0 : i32
    %2 = arith.cmpi ne, %1, %c0_i32_0 : i32
    scf.if %2 {
      %cst_10 = arith.constant 0.000000e+00 : f32
      %15 = vector.broadcast %cst_10 : f32 to vector<8x256xf32>
      %c0_11 = arith.constant 0 : index
      %c0_12 = arith.constant 0 : index
      %16 = vector.load %arg7[%c0_11, %c0_12] : memref<8x256xf32, #tpu.memory_space<vmem>>, vector<8x256xf32>
      tpu.vector_store %arg7[%c0_11, %c0_12], %15 {strides = array<i32>} : memref<8x256xf32, #tpu.memory_space<vmem>>, vector<8x256xf32>,
    } else {
    }
    %c0 = arith.constant 0 : index
    %c0_1 = arith.constant 0 : index
    %3 = vector.load %arg2[%c0, %c0_1] : memref<8x256xf32, #tpu.memory_space<vmem>>, vector<8x256xf32>
    %c0_2 = arith.constant 0 : index
    %c0_3 = arith.constant 0 : index
    %4 = vector.load %arg3[%c0_2, %c0_3] : memref<8x256xf32, #tpu.memory_space<vmem>>, vector<8x256xf32>
    %5 = arith.subf %3, %4 : vector<8x256xf32>
    %6 = arith.mulf %5, %5 : vector<8x256xf32>
    %c0_4 = arith.constant 0 : index
    %c0_5 = arith.constant 0 : index
    %7 = vector.load %arg7[%c0_4, %c0_5] : memref<8x256xf32, #tpu.memory_space<vmem>>, vector<8x256xf32>
    %8 = vector.shape_cast %6 : vector<8x256xf32> to vector<1x8x256xf32>
    %cst = arith.constant dense<0.000000e+00> : vector<8x256xf32>
    %9 = vector.multi_reduction <add>, %8, %cst [0] : vector<1x8x256xf32> to vector<8x256xf32>
    %10 = arith.addf %7, %9 : vector<8x256xf32>
    %c0_6 = arith.constant 0 : index
    %c0_7 = arith.constant 0 : index
    %11 = vector.load %arg7[%c0_6, %c0_7] : memref<8x256xf32, #tpu.memory_space<vmem>>, vector<8x256xf32>
    tpu.vector_store %arg7[%c0_6, %c0_7], %10 {strides = array<i32>} : memref<8x256xf32, #tpu.memory_space<vmem>>, vector<8x256xf32>,
    %c0_i32_8 = arith.constant 0 : i32
    %12 = arith.cmpi eq, %arg1, %c0_i32_8 : i32
    %13 = arith.extui %12 : i1 to i32
    %c0_i32_9 = arith.constant 0 : i32
    %14 = arith.cmpi ne, %13, %c0_i32_9 : i32
    scf.if %14 {
      %c0_10 = arith.constant 0 : index
      %c0_11 = arith.constant 0 : index
      %15 = vector.load %arg7[%c0_10, %c0_11] : memref<8x256xf32, #tpu.memory_space<vmem>>, vector<8x256xf32>
      %16 = vector.shape_cast %15 : vector<8x256xf32> to vector<1x8x256xf32>
      %cst_12 = arith.constant dense<0.000000e+00> : vector<1xf32>
      %17 = vector.multi_reduction <add>, %16, %cst_12 [1, 2] : vector<1x8x256xf32> to vector<1xf32>
      %18 = vector.shape_cast %17 : vector<1xf32> to vector<1x1x1xf32>
      %19 = vector.extract %18[0, 0, 0] : f32 from vector<1x1x1xf32>
      %c0_13 = arith.constant 0 : index
      %c0_14 = arith.constant 0 : index
      %20 = vector.load %arg4[%c0_13, %c0_14] : memref<2x32xf32, #tpu.memory_space<vmem>>, vector<2x32xf32>
      %c0_15 = arith.constant 0 : index
      %c0_16 = arith.constant 0 : index
      %21 = vector.load %arg5[%c0_15, %c0_16] : memref<2x32xf32, #tpu.memory_space<vmem>>, vector<2x32xf32>
      %cst_17 = arith.constant 1.000000e+00 : f32
      %22 = vector.broadcast %cst_17 : f32 to vector<2x32xf32>
      %23 = arith.addf %22, %21 : vector<2x32xf32>
      %24 = arith.mulf %20, %20 : vector<2x32xf32>
      %25 = arith.subf %23, %24 : vector<2x32xf32>
      %26 = math.exp %21 : vector<2x32xf32>
      %27 = arith.subf %25, %26 : vector<2x32xf32>
      %28 = vector.shape_cast %27 : vector<2x32xf32> to vector<1x2x32xf32>
      %cst_18 = arith.constant dense<0.000000e+00> : vector<1xf32>
      %29 = vector.multi_reduction <add>, %28, %cst_18 [1, 2] : vector<1x2x32xf32> to vector<1xf32>
      %30 = vector.shape_cast %29 : vector<1xf32> to vector<1x1x1xf32>
      %31 = vector.extract %30[0, 0, 0] : f32 from vector<1x1x1xf32>
      %cst_19 = arith.constant -5.000000e-01 : f32
      %32 = arith.mulf %cst_19, %31 : f32
      %33 = tpu.iota {dimensions = array<i32: 0>} : vector<8x128xi32>
      %34 = tpu.iota {dimensions = array<i32: 1>} : vector<8x128xi32>
      %c0_i32_20 = arith.constant 0 : i32
      %35 = vector.broadcast %c0_i32_20 : i32 to vector<8x128xi32>
      %36 = arith.cmpi eq, %33, %35 : vector<8x128xi32>
      %c0_i32_21 = arith.constant 0 : i32
      %37 = vector.broadcast %c0_i32_21 : i32 to vector<8x128xi32>
      %38 = arith.cmpi eq, %34, %37 : vector<8x128xi32>
      %39 = arith.andi %36, %38 : vector<8x128xi1>
      %c0_i32_22 = arith.constant 0 : i32
      %40 = vector.broadcast %c0_i32_22 : i32 to vector<8x128xi32>
      %41 = arith.cmpi eq, %33, %40 : vector<8x128xi32>
      %c1_i32 = arith.constant 1 : i32
      %42 = vector.broadcast %c1_i32 : i32 to vector<8x128xi32>
      %43 = arith.cmpi eq, %34, %42 : vector<8x128xi32>
      %44 = arith.andi %41, %43 : vector<8x128xi1>
      %cst_23 = arith.constant 0.000000e+00 : f32
      %45 = vector.broadcast %32 : f32 to vector<8x128xf32>
      %46 = vector.broadcast %cst_23 : f32 to vector<8x128xf32>
      %47 = arith.select %44, %45, %46 : vector<8x128xi1>, vector<8x128xf32>
      %48 = vector.broadcast %19 : f32 to vector<8x128xf32>
      %49 = arith.select %39, %48, %47 : vector<8x128xi1>, vector<8x128xf32>
      %c0_24 = arith.constant 0 : index
      %c0_25 = arith.constant 0 : index
      %c0_26 = arith.constant 0 : index
      %50 = vector.load %arg6[%c0_24, %c0_25, %c0_26] : memref<1x8x128xf32, #tpu.memory_space<vmem>>, vector<1x8x128xf32>
      %51 = vector.shape_cast %50 : vector<1x8x128xf32> to vector<8x128xf32>
      %52 = vector.shape_cast %49 : vector<8x128xf32> to vector<1x8x128xf32>
      tpu.vector_store %arg6[%c0_24, %c0_25, %c0_26], %52 {strides = array<i32>} : memref<1x8x128xf32, #tpu.memory_space<vmem>>, vector<1x8x128xf32>,
    } else {
    }
    return
  }
  func.func @transform_0(%arg0: i32, %arg1: i32) -> (i32, i32) {
    %c1_i32 = arith.constant 1 : i32
    %0 = arith.muli %arg0, %c1_i32 : i32
    %1 = arith.addi %0, %arg1 : i32
    %c0_i32 = arith.constant 0 : i32
    %c0_i32_0 = arith.constant 0 : i32
    return %1, %c0_i32 : i32, i32
  }
  func.func @transform_1(%arg0: i32, %arg1: i32) -> (i32, i32) {
    %c1_i32 = arith.constant 1 : i32
    %0 = arith.muli %arg0, %c1_i32 : i32
    %1 = arith.addi %0, %arg1 : i32
    %c0_i32 = arith.constant 0 : i32
    %c0_i32_0 = arith.constant 0 : i32
    return %1, %c0_i32 : i32, i32
  }
  func.func @transform_2(%arg0: i32, %arg1: i32) -> (i32, i32) {
    %c0_i32 = arith.constant 0 : i32
    %c0_i32_0 = arith.constant 0 : i32
    %c0_i32_1 = arith.constant 0 : i32
    return %c0_i32, %c0_i32_0 : i32, i32
  }
  func.func @transform_3(%arg0: i32, %arg1: i32) -> (i32, i32) {
    %c0_i32 = arith.constant 0 : i32
    %c0_i32_0 = arith.constant 0 : i32
    %c0_i32_1 = arith.constant 0 : i32
    return %c0_i32, %c0_i32_0 : i32, i32
  }
  func.func @transform_4(%arg0: i32, %arg1: i32) -> (i32, i32, i32) {
    %c0_i32 = arith.constant 0 : i32
    %c0_i32_0 = arith.constant 0 : i32
    %c0_i32_1 = arith.constant 0 : i32
    return %arg0, %c0_i32, %c0_i32_0 : i32, i32, i32
  }
}

</mosaic_0001>

<bundles_post_ra>
// kernel: tpu_custom_call.1
= control target key start
LH: loop header
LB: loop body
LE: loop exit
PB: predicated region body
PF: predicated region fallthrough
CT: control target
= control target key end

     0   :  { %9 = vsyncpa [#allocation4], 0  ;;  %s257_s0 = inlined_call_operand.hbm [shape: f32[8,256], index: 0, kind: input, shape index: {}]   ;;  %s258_s1 = inlined_call_operand.hbm [shape: f32[8,256], index: 1, kind: input, shape index: {}]   ;;  %s259_s2 = inlined_call_operand.vmem [shape: f32[2,32], index: 2, kind: input, shape index: {}]   ;;  %s260_s3 = inlined_call_operand.vmem [shape: f32[2,32], index: 3, kind: input, shape index: {}]   ;;  %s261_s4 = inlined_call_operand.hbm [shape: f32[1,8,128], index: 4, kind: output, shape index: {}]  }
   0x1   :  { %10 = vsyncpa [#allocation7], 0 }
   0x2   :  { %11 = vsyncpa [#allocation5], 0  ;;  %s214_s15 = smov [#allocation3]   ;;  %s215_s17 = smov [#allocation6]  }
   0x3   :  { %s22_s16 = sshll.u32 %s214_s15, 4  ;;  %s36_s18 = sshll.u32 %s215_s17, 4  ;;  %s23_s16 = int_to_ptr.vmem [resolvable:$true] %s22_s16  ;;  %s37_s18 = int_to_ptr.vmem [resolvable:$true] %s36_s18 }
   0x4   :  { %s156_s19 = scalar_lea.vmem %s23_s16, 256  ;;  %p161_p1 = scmp.lt.s32.totalorder %s23_s16, %s23_s16 }
   0x5   :  { %p157_p0 = scmp.ne.s32.totalorder %s23_s16, %s156_s19  ;;  %p162_p2 = scmp.lt.s32.totalorder %s156_s19, %s156_s19 }
   0x7   :  { %p163_p3 = por %p162_p2, %p161_p1 }
   0x9   :  { %p164_p4 = pnand %p163_p3, %p157_p0 }
   0xb   :  { %167 = shalt.err (!%p164_p4)
}
   0xc   :  { %25 = dma.hbm_to_vmem [thread:$0]  %s257_s0, 256, %s23_s16, [#allocation4]  }
   0xd   :  { %s176_s22 = scalar_lea.vmem %s37_s18, 256  ;;  %p181_p6 = scmp.lt.s32.totalorder %s37_s18, %s37_s18 }
   0xe   :  { %p177_p5 = scmp.ne.s32.totalorder %s37_s18, %s176_s22  ;;  %p182_p7 = scmp.lt.s32.totalorder %s176_s22, %s176_s22 }
  0x10   :  { %p183_p8 = por %p182_p7, %p181_p6 }
  0x12   :  { %p184_p9 = pnand %p183_p8, %p177_p5 }
  0x14   :  { %187 = shalt.err (!%p184_p9)
}
  0x15   :  { %39 = dma.hbm_to_vmem [thread:$0]  %s258_s1, 256, %s37_s18, [#allocation7]  }
  0x16   :  { %208 = dma.done.wait [#allocation4], 256  }
  0x17   :  { %209 = vsyncadd [#allocation4], 4294967040 }
  0x18   :  { %210 = dma.done.wait [#allocation7], 256  }
  0x19   :  { %211 = vsyncadd [#allocation7], 4294967040  ;;  %v58_v0 = vld [vmem:[#allocation3] sm:$0xff]  ;;  %v59_v1 = vld [vmem:[#allocation3 + $0x8] sm:$0xff]  ;;  %vm97_vm0 = vcmask 254976   ;;  %v109_v32 = vlaneseq  ;;  %s216_s28 = smov [#allocation8]  }
  0x1a   :  { %v60_v2 = vld [vmem:[#allocation6] sm:$0xff]  ;;  %v61_v3 = vld [vmem:[#allocation6 + $0x8] sm:$0xff]  ;;  %v90_v5 = vld [vmem:[%s260_s3] sm:$0x3]  ;;  %s129_s29 = sshll.u32 %s216_s28, 4  ;;  %s130_s29 = int_to_ptr.vmem [resolvable:$true] %s129_s29 }
  0x1b   :  { %v62_v4 = vsub.f32 %v58_v0, %v60_v2  ;;  %v63_v6 = vsub.f32 %v59_v1, %v61_v3  ;;  %v94_v7 = vmul.f32 1.442695, %v90_v5  ;;  %v89_v11 = vld [vmem:[%s259_s2] sm:$0x3]  ;;  %v91_v12 = vadd.f32 1.0, %v90_v5  ;;  %s188_s30 = scalar_lea.vmem %s130_s29, 128  ;;  %p193_p11 = scmp.lt.s32.totalorder %s130_s29, %s130_s29 }
  0x1c   :  { %v92_v13 = vmul.f32 %v89_v11, %v89_v11  ;;  %v110_v33 = vshrl.u32 %v109_v32, 7  ;;  %v112_v34 = vand.u32 127, %v109_v32  ;;  %p189_p10 = scmp.ne.s32.totalorder %s130_s29, %s188_s30  ;;  %p194_p12 = scmp.lt.s32.totalorder %s188_s30, %s188_s30 }
  0x1d   :  { %v64_v8 = vmul.f32 %v62_v4, %v62_v4  ;;  %v65_v9 = vmul.f32 %v63_v6, %v63_v6  ;;  %146 = vpow2.f32 %v94_v7 }
  0x1e   :  { %v93_v14 = vsub.f32 %v91_v12, %v92_v13  ;;  %vm113_vm1 = vcmp.eq.s32.totalorder %v110_v33, 0  ;;  %vm116_vm2 = vcmp.eq.s32.totalorder %v112_v34, 1  ;;  %vm114_vm3 = vcmp.eq.s32.totalorder %v112_v34, 0  ;;  %p195_p13 = por %p194_p12, %p193_p11 }
  0x1f   :  { %v79_v10 = vadd.f32 %v65_v9, %v64_v8  ;;  %vm117_vm4 = vmand %vm113_vm1, %vm116_vm2 }
  0x20   :  { %vm115_vm5 = vmand %vm113_vm1, %vm114_vm3  ;;  %p196_p0 = pnand %p195_p13, %p189_p10 }
  0x21   :  { %80 = vadd.xlane.f32.xlu0 %v79_v10 }
  0x2a   :  { %v147_v15 = vpop.eup %146 }
  0x2b   :  { %v96_v16 = vsub.f32 %v93_v14, %v147_v15 }
  0x2d   :  { %v98_v17 = vsel %vm97_vm0, %v96_v16, 0.0 }
  0x2e   :  { %99 = vadd.xlane.f32.xlu0 %v98_v17 }
  0xaa   :  { %v81_v18 = vpop.xlane.xlu0 %80 }
  0xab   :  { %v82_v19 = vrot.slane %v81_v18, 4 }
  0xad   :  { %v83_v20 = vadd.f32 %v82_v19, %v81_v18 }
  0xaf   :  { %v84_v21 = vrot.slane %v83_v20, 2 }
  0xb1   :  { %v85_v22 = vadd.f32 %v84_v21, %v83_v20 }
  0xb3   :  { %v86_v23 = vrot.slane %v85_v22, 1 }
  0xb5   :  { %v87_v24 = vadd.f32 %v86_v23, %v85_v22 }
  0xb7   :  { %v100_v25 = vpop.xlane.xlu0 %99  ;;  %139 = vpush %v87_v24 }
  0xb8   :  { %v101_v26 = vrot.slane %v100_v25, 4 }
  0xba   :  { %v102_v27 = vadd.f32 %v101_v26, %v100_v25 }
  0xbc   :  { %v103_v28 = vrot.slane %v102_v27, 2 }
  0xbe   :  { %v104_v29 = vadd.f32 %v103_v28, %v102_v27 }
  0xc0   :  { %v105_v30 = vrot.slane %v104_v29, 1 }
  0xc2   :  { %v106_v31 = vadd.f32 %v105_v30, %v104_v29 }
  0xc4   :  { %141 = vpush %v106_v31 }
  0xe8   :  { %s140_s2 = spop %139 }
  0xe9   :  { %v120_v36 = vstv %s140_s2 }
  0xf5   :  { %s142_s3 = spop %141 }
  0xf6   :  { %s108_s27 = smul.f32 -0.5, %s142_s3 }
  0xf8   :  { %v118_v35 = vstv %s108_s27 }
  0xf9   :  { %v119_v37 = vsel %vm117_vm4, %v118_v35, 0.0 }
  0xfa   :  { %v121_v38 = vsel %vm115_vm5, %v120_v36, %v119_v37 }
  0xfb   :  { %122 = vst [vmem:[#allocation8] sm:$0xff] %v121_v38 }
  0xfc   :  { %199 = shalt.err (!%p196_p0)
}
  0xfd   :  { %132 = dma.vmem_to_hbm [thread:$0]  %s130_s29, 128, %s261_s4, [#allocation5]  }
  0xfe   :  { %212 = dma.done.wait [#allocation5], 128  }
  0xff   :  { %213 = vsyncadd [#allocation5], 4294967168 }
 0x100   :  { %136 = vsyncpa [#allocation4], 1 }
 0x101   :  { %137 = vsyncpa [#allocation7], 1 }
 0x102   :  { %138 = vsyncpa [#allocation5], 1 }

</bundles_post_ra>
